<compile_context>
chip_gen: v7x
topology: tpu7x:2x2x1
jax: 0.10.0
libtpu: 0.0.40
codegen_flags: <defaults>
</compile_context>

<pallas_src>
import functools
import math

import jax
import jax.numpy as jnp
from jax.experimental import pallas as pl
from jax.experimental.pallas import tpu as pltpu

NLEV = 128                                  # vertical levels (lane-aligned)
NBV = 2.16e-2                               # Brunt-Vaisala frequency [1/s]
TWO_PI = 2.0 * math.pi
OMEGA_SAO = TWO_PI / 180.0 / 86400.0        # SAO angular frequency [1/s]
TB_MAX = 128                                # default step-tile (MXU M) size
_CRIT_EPS = 1e-20                           # clamp for (c - u)^2 at critical levels


def _round_up(x, m):
    return ((x + m - 1) // m) * m


# ---------------------------------------------------------------------------
# Pallas kernel: source-term evaluation for a tile of TB time steps.
# ---------------------------------------------------------------------------
def wave_spectrum_kernel(c1_ref, a1_ref, c2_ref, a2_ref, u_ref,
                         galpha_ref, gbase_ref, w_ref, d1t_ref, out_ref):
    """c*_ref, a*_ref : VMEM (TB, 1)  per-step phase speed / amplitude columns
       u_ref          : VMEM (TB, n)  zonal wind profiles for these steps
       galpha_ref     : VMEM (2, n)   NBV * alpha / k_w per wave
       gbase_ref      : VMEM (1, n)   SAO profile (mask, scale, sin(omega*t) folded)
       w_ref          : VMEM (n, n)   cumulative-trapezoid weight matrix
       d1t_ref        : VMEM (n, n)   D1^T with rho[0]/rho folded into its columns
       out_ref        : VMEM (TB, n)  source term s for these steps"""
    u = u_ref[...]                                      # (TB, n)
    gal = galpha_ref[...]                               # (2, n)

    # g_w = NBV*alpha / (k_w * (c_w - u)^2).  Clamp the square so an exact
    # critical level gives a huge-but-finite g (exp(-huge) -> 0 downstream)
    # instead of inf * 0 = NaN inside the cumtrapz matmul.
    du1 = c1_ref[...] - u                               # (TB,1) lane-broadcast
    du2 = c2_ref[...] - u
    g1 = gal[0:1, :] / jnp.maximum(du1 * du1, _CRIT_EPS)   # (TB, n)
    g2 = gal[1:2, :] / jnp.maximum(du2 * du2, _CRIT_EPS)   # (TB, n)

    # Cumulative trapezoid (with leading zero) for the whole step tile:
    # dense MXU matmuls, same pushed weight W for both waves.
    i1 = jnp.dot(g1, w_ref[...], preferred_element_type=jnp.float32)
    i2 = jnp.dot(g2, w_ref[...], preferred_element_type=jnp.float32)

    # Ftot = A1*exp(-I1) + A2*exp(-I2): EUP exp + VALU combine.
    ftot = a1_ref[...] * jnp.exp(-i1) + a2_ref[...] * jnp.exp(-i2)   # (TB, n)

    # s = (D1 @ Ftot) * rho[0]/rho - G   (rho ratio folded into d1t columns,
    # sin(omega*t) folded into gbase).
    s = jnp.dot(ftot, d1t_ref[...], preferred_element_type=jnp.float32)
    out_ref[...] = s - gbase_ref[...]


@functools.partial(jax.jit, static_argnames=("tb",))
def _wave_spectrum_steps(c1, a1, c2, a2, u, galpha, gbase, w_mat, d1t, *, tb):
    """Run a padded batch of B_pad steps (B_pad % tb == 0) in one pallas_call."""
    b_pad, n = u.shape
    return pl.pallas_call(
        wave_spectrum_kernel,
        out_shape=jax.ShapeDtypeStruct((b_pad, n), jnp.float32),
        grid_spec=pltpu.PrefetchScalarGridSpec(
            num_scalar_prefetch=0,
            grid=(b_pad // tb,),
            in_specs=[
                pl.BlockSpec((tb, 1), lambda i: (i, 0)),   # c1
                pl.BlockSpec((tb, 1), lambda i: (i, 0)),   # A1
                pl.BlockSpec((tb, 1), lambda i: (i, 0)),   # c2
                pl.BlockSpec((tb, 1), lambda i: (i, 0)),   # A2
                pl.BlockSpec((tb, n), lambda i: (i, 0)),   # u
                pl.BlockSpec((2, n), lambda i: (0, 0)),    # galpha
                pl.BlockSpec((1, n), lambda i: (0, 0)),    # G_base * sin(wt)
                pl.BlockSpec((n, n), lambda i: (0, 0)),    # W (cumtrapz)
                pl.BlockSpec((n, n), lambda i: (0, 0)),    # D1^T scaled
            ],
            out_specs=pl.BlockSpec((tb, n), lambda i: (i, 0)),
        ),
        compiler_params=pltpu.CompilerParams(
            dimension_semantics=("parallel",)),
    )(c1, a1, c2, a2, u, galpha, gbase, w_mat, d1t)


# ---------------------------------------------------------------------------
# Host-side precompute helpers.
# ---------------------------------------------------------------------------
def make_cumtrapz_weight_matrix(n, dz):
    """W such that (g @ W)[i] == hstack(0, cumulative_trapezoid(g, dx=dz))[i]."""
    j = jnp.arange(n)[:, None]   # source level
    i = jnp.arange(n)[None, :]   # output level
    w = jnp.where(j < i, dz, 0.0)
    w = jnp.where(j == i, 0.5 * dz, w)
    w = jnp.where((j == 0) & (i > 0), 0.5 * dz, w)
    w = jnp.where(i == 0, 0.0, w)
    return w.astype(jnp.float32)


def sample_as_cs(n, ase, asv, cse, csv, corr, key):
    """JAX port of sample_as_cs (bivariate lognormal draw).

    mu / sigma computed in host double precision to avoid f32 catastrophic
    cancellation in log(es^2) - 2*mu."""
    mu0 = -0.5 * math.log(asv / ase ** 4 + 1.0 / ase ** 2)
    mu1 = -0.5 * math.log(csv / cse ** 4 + 1.0 / cse ** 2)
    var0 = math.log(ase ** 2) - 2.0 * mu0
    var1 = math.log(cse ** 2) - 2.0 * mu1
    cov01 = corr * math.sqrt(var0 * var1)
    mu = jnp.array([mu0, mu1], jnp.float32)
    sigma = jnp.array([[var0, cov01], [cov01, var1]], jnp.float32)
    normal_samples = jax.random.multivariate_normal(key, mu, sigma, shape=(n,))
    lognormal = jnp.exp(normal_samples)
    return lognormal[:, 0], lognormal[:, 1]


# ---------------------------------------------------------------------------
# Plain-Python state holder; the per-step compute runs in the Pallas kernel.
# ---------------------------------------------------------------------------
class WaveSpectrum:
    def __init__(self, z, D1, nsteps, dz, current_time=0.0, Gsa=0.0,
                 ase=0.0006, asv=1e-12, cse=32.0, csv=25.0, corr=0.75,
                 seed=int(21 * 9 + 8), tile_steps=TB_MAX):
        self._z = jnp.asarray(z, jnp.float32)
        self._nlev = int(self._z.shape[0])
        self._nsteps = int(nsteps)
        self._dz = float(dz)
        self._current_step = 0
        self._current_time = float(current_time)
        self._Gsa = float(Gsa)
        self._D1 = jnp.asarray(D1, jnp.float32)
        self._tb_max = max(8, _round_up(int(tile_steps), 8))

        # utils.get_rho: rho = rho0 * exp(-z / H)
        self._rho = (1.2 * jnp.exp(-self._z / 7000.0)).astype(jnp.float32)
        # TODO(synk): utils.get_alpha not provided; deterministic smooth stand-in.
        self._alpha = (1.0 / (21.0 * 86400.0)
                       + (1.0 / (7.0 * 86400.0) - 1.0 / (21.0 * 86400.0))
                       * 0.5 * (1.0 + jnp.tanh((self._z - 25000.0) / 7000.0))
                       ).astype(jnp.float32)

        key = jax.random.PRNGKey(seed)
        As, cs = sample_as_cs(self._nsteps, ase, asv, cse, csv, corr, key)
        As = As / 0.1006
        self.As = jnp.stack([As, -As], axis=1).astype(jnp.float32)   # (nsteps, 2)
        self.cs = jnp.stack([cs, -cs], axis=1).astype(jnp.float32)   # (nsteps, 2)
        self.ks = (TWO_PI / 40000000.0) * jnp.ones(2, jnp.float32)   # (2,)

        self.s = jnp.zeros((self._nsteps, self._nlev), jnp.float32)

        # ---- step-invariant kernel inputs (precomputed once) ----
        n = self._nlev
        self._galpha = (NBV * self._alpha[None, :]
                        / self.ks[:, None]).astype(jnp.float32)      # (2, n)
        # SAO spatial profile with sin(omega*t) folded in.
        # TODO(synk): like the torch module, _current_time is frozen at
        # construction; call _refresh_time(t) if a driving solver advances time.
        gbase = jnp.where(
            (self._z >= 28000.0) & (self._z <= 35000.0),
            self._Gsa * 2.0 * (self._z - 28000.0) * 0.001 * OMEGA_SAO,
            0.0).astype(jnp.float32).reshape(1, n)                   # (1, n)
        self._gbase_profile = gbase
        self._gbase_t = (gbase * math.sin(OMEGA_SAO * self._current_time)
                         ).astype(jnp.float32)
        self._w_mat = make_cumtrapz_weight_matrix(n, self._dz)       # (n, n)
        rho_ratio = (self._rho[0] / self._rho).astype(jnp.float32)
        self._d1t_scaled = (self._D1.T * rho_ratio[None, :]).astype(jnp.float32)

        # Per-step scalar columns (VMEM-friendly, no SMEM padding blow-up).
        self._a1 = self.As[:, 0:1]    # (nsteps, 1)
        self._c1 = self.cs[:, 0:1]
        self._a2 = self.As[:, 1:2]
        self._c2 = self.cs[:, 1:2]

    def _refresh_time(self, t):
        self._current_time = float(t)
        self._gbase_t = (self._gbase_profile
                         * math.sin(OMEGA_SAO * self._current_time)
                         ).astype(jnp.float32)

    def _run(self, step, u_rows):
        """Evaluate steps [step, step + B) for the given wind profiles."""
        b = u_rows.shape[0]
        tb = min(self._tb_max, _round_up(b, 8))
        b_pad = _round_up(b, tb)
        pad = b_pad - b

        def padrows(x):
            return jnp.pad(x, ((0, pad), (0, 0))) if pad else x

        sl = slice(step, step + b)
        s = _wave_spectrum_steps(
            padrows(self._c1[sl]), padrows(self._a1[sl]),
            padrows(self._c2[sl]), padrows(self._a2[sl]),
            padrows(u_rows.astype(jnp.float32)),
            self._galpha, self._gbase_t, self._w_mat, self._d1t_scaled,
            tb=tb)
        return s[:b]

    def forward(self, u):
        """Original per-step nn.Module interface (one padded tile per call).

        Dispatch + the functional self.s row update dominate this path; prefer
        forward_many for driving many steps."""
        step = self._current_step
        u_row = jnp.asarray(u, jnp.float32).reshape(1, self._nlev)
        s = self._run(step, u_row)[0]
        self.s = self.s.at[step].set(s)
        self._current_step += 1
        return s

    def forward_many(self, u_batch):
        """Evaluate the next B steps (given their wind profiles) in ONE
        pallas_call: B steps live in the MXU M dimension in tiles of TB, so
        dispatch, weight pushes and DMAs are amortized across the batch."""
        b = int(u_batch.shape[0])
        step = self._current_step
        u_rows = jnp.asarray(u_batch, jnp.float32).reshape(b, self._nlev)
        s = self._run(step, u_rows)
        self.s = self.s.at[step:step + b].set(s)   # single batched update
        self._current_step += b
        return s


# ---------------------------------------------------------------------------
# Pure-JAX reference (mirrors the torch forward) for validation.
# ---------------------------------------------------------------------------
def reference_forward(u, A, c, k, z, alpha, rho, D1, dz, Gsa, t):
    ftot = jnp.zeros_like(u)
    for w in range(2):
        g = NBV * alpha / (k[w] * (c[w] - u) ** 2)
        h = 0.5 * dz * (g[1:] + g[:-1])
        integral = jnp.concatenate([jnp.zeros((1,), g.dtype), jnp.cumsum(h)])
        ftot = ftot + A[w] * jnp.exp(-integral)
    G = jnp.where((z >= 28000.0) & (z <= 35000.0),
                  Gsa * 2.0 * (z - 28000.0) * 0.001 * OMEGA_SAO
                  * jnp.sin(OMEGA_SAO * t),
                  0.0)
    return (D1 @ ftot) * rho[0] / rho - G


def make_centered_diff_D1(n, dz):
    """Centered-difference differentiation matrix (stand-in for solver.D1)."""
    D1 = jnp.zeros((n, n), jnp.float32)
    idx = jnp.arange(1, n - 1)
    D1 = D1.at[idx, idx + 1].set(1.0 / (2.0 * dz))
    D1 = D1.at[idx, idx - 1].set(-1.0 / (2.0 * dz))
    D1 = D1.at[0, 0].set(-1.0 / dz).at[0, 1].set(1.0 / dz)
    D1 = D1.at[n - 1, n - 1].set(1.0 / dz).at[n - 1, n - 2].set(-1.0 / dz)
    return D1


def _rel_err(a, b):
    return float(jnp.max(jnp.abs(a - b)) / (jnp.max(jnp.abs(b)) + 1e-30))


if __name__ == "__main__":
    nlev = NLEV
    nsteps = 8
    z = jnp.linspace(17000.0, 35000.0, nlev)
    dz = float(z[1] - z[0])
    D1 = make_centered_diff_D1(nlev, dz)
    gsa = 3.0
    t0 = 45.0 * 86400.0

    u_all = 10.0 * jax.random.normal(jax.random.PRNGKey(0), (nsteps, nlev),
                                     dtype=jnp.float32)

    # (a) original step-by-step interface.
    model = WaveSpectrum(z=z, D1=D1, nsteps=nsteps, dz=dz,
                         current_time=t0, Gsa=gsa)
    s0 = model.forward(u_all[0])
    s1 = model.forward(u_all[1])
    s1 = jax.block_until_ready(s1)
    assert s0.shape == (nlev,) and s0.dtype == jnp.float32
    assert bool(jnp.all(jnp.isfinite(s0))) and bool(jnp.all(jnp.isfinite(s1)))

    # pure-JAX reference check (step 0).
    s_ref = reference_forward(u_all[0], model.As[0], model.cs[0], model.ks,
                              model._z, model._alpha, model._rho, D1, dz,
                              Gsa=gsa, t=t0)
    rel = _rel_err(s0, s_ref)
    assert rel < 2e-2, f"kernel vs reference mismatch: rel={rel}"

    # (b) batched path: 4 steps in one pallas_call (steps in the MXU M dim).
    model_b = WaveSpectrum(z=z, D1=D1, nsteps=nsteps, dz=dz,
                           current_time=t0, Gsa=gsa)
    s_batch = jax.block_until_ready(model_b.forward_many(u_all[:4]))
    assert s_batch.shape == (4, nlev)
    assert bool(jnp.all(jnp.isfinite(s_batch)))
    assert _rel_err(s_batch[0], s0) < 1e-4
    assert _rel_err(s_batch[1], s1) < 1e-4

    print("KERNEL_OK")
</pallas_src>

<mosaic_0001>
module attributes {stable_mosaic.version = 11 : i64} {
  func.func @wave_spectrum_kernel(%arg0: i32, %arg1: memref<8x1xf32, #tpu.memory_space<vmem>>, %arg2: memref<8x1xf32, #tpu.memory_space<vmem>>, %arg3: memref<8x1xf32, #tpu.memory_space<vmem>>, %arg4: memref<8x1xf32, #tpu.memory_space<vmem>>, %arg5: memref<8x128xf32, #tpu.memory_space<vmem>>, %arg6: memref<2x128xf32, #tpu.memory_space<vmem>>, %arg7: memref<1x128xf32, #tpu.memory_space<vmem>>, %arg8: memref<128x128xf32, #tpu.memory_space<vmem>>, %arg9: memref<128x128xf32, #tpu.memory_space<vmem>>, %arg10: memref<8x128xf32, #tpu.memory_space<vmem>>) attributes {dimension_semantics = [#tpu.dimension_semantics<parallel>], iteration_bounds = array<i64: 1>, scalar_prefetch = 0 : i64, scratch_operands = 0 : i64, tpu.core_type = #tpu.core_type<tc>, window_params = [{transform_indices = @transform_0, window_bounds = array<i64: 8, 1>}, {transform_indices = @transform_1, window_bounds = array<i64: 8, 1>}, {transform_indices = @transform_2, window_bounds = array<i64: 8, 1>}, {transform_indices = @transform_3, window_bounds = array<i64: 8, 1>}, {transform_indices = @transform_4, window_bounds = array<i64: 8, 128>}, {pipeline_mode = #tpu.pipeline_mode<synchronous>, transform_indices = @transform_5, window_bounds = array<i64: 2, 128>}, {pipeline_mode = #tpu.pipeline_mode<synchronous>, transform_indices = @transform_6, window_bounds = array<i64: 1, 128>}, {pipeline_mode = #tpu.pipeline_mode<synchronous>, transform_indices = @transform_7, window_bounds = array<i64: 128, 128>}, {pipeline_mode = #tpu.pipeline_mode<synchronous>, transform_indices = @transform_8, window_bounds = array<i64: 128, 128>}, {transform_indices = @transform_9, window_bounds = array<i64: 8, 128>}]} {
    %c0 = arith.constant 0 : index
    %c0_0 = arith.constant 0 : index
    %0 = vector.load %arg5[%c0, %c0_0] : memref<8x128xf32, #tpu.memory_space<vmem>>, vector<8x128xf32>
    %c0_1 = arith.constant 0 : index
    %c0_2 = arith.constant 0 : index
    %1 = vector.load %arg6[%c0_1, %c0_2] : memref<2x128xf32, #tpu.memory_space<vmem>>, vector<2x128xf32>
    %c0_3 = arith.constant 0 : index
    %c0_4 = arith.constant 0 : index
    %2 = vector.load %arg1[%c0_3, %c0_4] : memref<8x1xf32, #tpu.memory_space<vmem>>, vector<8x1xf32>
    %3 = vector.broadcast %2 : vector<8x1xf32> to vector<8x128xf32>
    %4 = arith.subf %3, %0 : vector<8x128xf32>
    %c0_5 = arith.constant 0 : index
    %c0_6 = arith.constant 0 : index
    %5 = vector.load %arg3[%c0_5, %c0_6] : memref<8x1xf32, #tpu.memory_space<vmem>>, vector<8x1xf32>
    %6 = vector.broadcast %5 : vector<8x1xf32> to vector<8x128xf32>
    %7 = arith.subf %6, %0 : vector<8x128xf32>
    %8 = vector.extract_strided_slice %1 {offsets = [0, 0], sizes = [1, 128], strides = [1, 1]} : vector<2x128xf32> to vector<1x128xf32>
    %9 = arith.mulf %4, %4 : vector<8x128xf32>
    %cst = arith.constant 9.99999968E-21 : f32
    %10 = vector.broadcast %cst : f32 to vector<8x128xf32>
    %11 = arith.maximumf %9, %10 : vector<8x128xf32>
    %12 = vector.broadcast %8 : vector<1x128xf32> to vector<8x128xf32>
    %13 = arith.divf %12, %11 : vector<8x128xf32>
    %14 = vector.extract_strided_slice %1 {offsets = [1, 0], sizes = [1, 128], strides = [1, 1]} : vector<2x128xf32> to vector<1x128xf32>
    %15 = arith.mulf %7, %7 : vector<8x128xf32>
    %cst_7 = arith.constant 9.99999968E-21 : f32
    %16 = vector.broadcast %cst_7 : f32 to vector<8x128xf32>
    %17 = arith.maximumf %15, %16 : vector<8x128xf32>
    %18 = vector.broadcast %14 : vector<1x128xf32> to vector<8x128xf32>
    %19 = arith.divf %18, %17 : vector<8x128xf32>
    %c0_8 = arith.constant 0 : index
    %c0_9 = arith.constant 0 : index
    %20 = vector.load %arg8[%c0_8, %c0_9] : memref<128x128xf32, #tpu.memory_space<vmem>>, vector<128x128xf32>
    %cst_10 = arith.constant dense<0.000000e+00> : vector<8x128xf32>
    %21 = tpu.matmul %13, %20, %cst_10 {dimension_numbers = #tpu.dot_dimension_numbers<[1], [0], [0], [1], [0, 0, 1, 1], [], []>} : vector<8x128xf32>, vector<128x128xf32>, vector<8x128xf32> -> vector<8x128xf32>
    %c0_11 = arith.constant 0 : index
    %c0_12 = arith.constant 0 : index
    %22 = vector.load %arg8[%c0_11, %c0_12] : memref<128x128xf32, #tpu.memory_space<vmem>>, vector<128x128xf32>
    %cst_13 = arith.constant dense<0.000000e+00> : vector<8x128xf32>
    %23 = tpu.matmul %19, %22, %cst_13 {dimension_numbers = #tpu.dot_dimension_numbers<[1], [0], [0], [1], [0, 0, 1, 1], [], []>} : vector<8x128xf32>, vector<128x128xf32>, vector<8x128xf32> -> vector<8x128xf32>
    %c0_14 = arith.constant 0 : index
    %c0_15 = arith.constant 0 : index
    %24 = vector.load %arg2[%c0_14, %c0_15] : memref<8x1xf32, #tpu.memory_space<vmem>>, vector<8x1xf32>
    %cst_16 = arith.constant 0.000000e+00 : f32
    %25 = vector.broadcast %cst_16 : f32 to vector<8x128xf32>
    %26 = arith.subf %25, %21 : vector<8x128xf32>
    %27 = math.exp %26 : vector<8x128xf32>
    %28 = vector.broadcast %24 : vector<8x1xf32> to vector<8x128xf32>
    %29 = arith.mulf %28, %27 : vector<8x128xf32>
    %c0_17 = arith.constant 0 : index
    %c0_18 = arith.constant 0 : index
    %30 = vector.load %arg4[%c0_17, %c0_18] : memref<8x1xf32, #tpu.memory_space<vmem>>, vector<8x1xf32>
    %cst_19 = arith.constant 0.000000e+00 : f32
    %31 = vector.broadcast %cst_19 : f32 to vector<8x128xf32>
    %32 = arith.subf %31, %23 : vector<8x128xf32>
    %33 = math.exp %32 : vector<8x128xf32>
    %34 = vector.broadcast %30 : vector<8x1xf32> to vector<8x128xf32>
    %35 = arith.mulf %34, %33 : vector<8x128xf32>
    %36 = arith.addf %29, %35 : vector<8x128xf32>
    %c0_20 = arith.constant 0 : index
    %c0_21 = arith.constant 0 : index
    %37 = vector.load %arg9[%c0_20, %c0_21] : memref<128x128xf32, #tpu.memory_space<vmem>>, vector<128x128xf32>
    %cst_22 = arith.constant dense<0.000000e+00> : vector<8x128xf32>
    %38 = tpu.matmul %36, %37, %cst_22 {dimension_numbers = #tpu.dot_dimension_numbers<[1], [0], [0], [1], [0, 0, 1, 1], [], []>} : vector<8x128xf32>, vector<128x128xf32>, vector<8x128xf32> -> vector<8x128xf32>
    %c0_23 = arith.constant 0 : index
    %c0_24 = arith.constant 0 : index
    %39 = vector.load %arg7[%c0_23, %c0_24] : memref<1x128xf32, #tpu.memory_space<vmem>>, vector<1x128xf32>
    %40 = vector.broadcast %39 : vector<1x128xf32> to vector<8x128xf32>
    %41 = arith.subf %38, %40 : vector<8x128xf32>
    %c0_25 = arith.constant 0 : index
    %c0_26 = arith.constant 0 : index
    %42 = vector.load %arg10[%c0_25, %c0_26] : memref<8x128xf32, #tpu.memory_space<vmem>>, vector<8x128xf32>
    tpu.vector_store %arg10[%c0_25, %c0_26], %41 {strides = array<i32>} : memref<8x128xf32, #tpu.memory_space<vmem>>, vector<8x128xf32>,
    return
  }
  func.func @transform_0(%arg0: i32) -> (i32, i32) {
    %c0_i32 = arith.constant 0 : i32
    %c0_i32_0 = arith.constant 0 : i32
    return %arg0, %c0_i32 : i32, i32
  }
  func.func @transform_1(%arg0: i32) -> (i32, i32) {
    %c0_i32 = arith.constant 0 : i32
    %c0_i32_0 = arith.constant 0 : i32
    return %arg0, %c0_i32 : i32, i32
  }
  func.func @transform_2(%arg0: i32) -> (i32, i32) {
    %c0_i32 = arith.constant 0 : i32
    %c0_i32_0 = arith.constant 0 : i32
    return %arg0, %c0_i32 : i32, i32
  }
  func.func @transform_3(%arg0: i32) -> (i32, i32) {
    %c0_i32 = arith.constant 0 : i32
    %c0_i32_0 = arith.constant 0 : i32
    return %arg0, %c0_i32 : i32, i32
  }
  func.func @transform_4(%arg0: i32) -> (i32, i32) {
    %c0_i32 = arith.constant 0 : i32
    %c0_i32_0 = arith.constant 0 : i32
    return %arg0, %c0_i32 : i32, i32
  }
  func.func @transform_5(%arg0: i32) -> (i32, i32) {
    %c0_i32 = arith.constant 0 : i32
    %c0_i32_0 = arith.constant 0 : i32
    %c0_i32_1 = arith.constant 0 : i32
    return %c0_i32, %c0_i32_0 : i32, i32
  }
  func.func @transform_6(%arg0: i32) -> (i32, i32) {
    %c0_i32 = arith.constant 0 : i32
    %c0_i32_0 = arith.constant 0 : i32
    %c0_i32_1 = arith.constant 0 : i32
    return %c0_i32, %c0_i32_0 : i32, i32
  }
  func.func @transform_7(%arg0: i32) -> (i32, i32) {
    %c0_i32 = arith.constant 0 : i32
    %c0_i32_0 = arith.constant 0 : i32
    %c0_i32_1 = arith.constant 0 : i32
    return %c0_i32, %c0_i32_0 : i32, i32
  }
  func.func @transform_8(%arg0: i32) -> (i32, i32) {
    %c0_i32 = arith.constant 0 : i32
    %c0_i32_0 = arith.constant 0 : i32
    %c0_i32_1 = arith.constant 0 : i32
    return %c0_i32, %c0_i32_0 : i32, i32
  }
  func.func @transform_9(%arg0: i32) -> (i32, i32) {
    %c0_i32 = arith.constant 0 : i32
    %c0_i32_0 = arith.constant 0 : i32
    return %arg0, %c0_i32 : i32, i32
  }
}

</mosaic_0001>

<bundles_post_ra>
// kernel: _wave_spectrum_steps.1
= control target key start
LH: loop header
LB: loop body
LE: loop exit
PB: predicated region body
PF: predicated region fallthrough
CT: control target
= control target key end

     0   :  { %14 = vsyncpa [#allocation3], 0  ;;  %s847_s0 = inlined_call_operand.vmem [shape: f32[8,1], index: 0, kind: input, shape index: {}]   ;;  %s848_s1 = inlined_call_operand.vmem [shape: f32[8,1], index: 1, kind: input, shape index: {}]   ;;  %s849_s2 = inlined_call_operand.vmem [shape: f32[8,1], index: 2, kind: input, shape index: {}]   ;;  %s850_s3 = inlined_call_operand.vmem [shape: f32[8,1], index: 3, kind: input, shape index: {}]   ;;  %s851_s4 = inlined_call_operand.vmem [shape: f32[8,128], index: 4, kind: input, shape index: {}]   ;;  %s852_s5 = inlined_call_operand.vmem [shape: f32[2,128], index: 5, kind: input, shape index: {}]   ;;  %s853_s6 = inlined_call_operand.vmem [shape: f32[1,128], index: 6, kind: input, shape index: {}]   ;;  %s854_s7 = inlined_call_operand.hbm [shape: f32[128,128], index: 7, kind: input, shape index: {}]   ;;  %s855_s8 = inlined_call_operand.hbm [shape: f32[128,128], index: 8, kind: input, shape index: {}]   ;;  %s856_s9 = inlined_call_operand.hbm [shape: f32[8,128], index: 9, kind: output, shape index: {}]  }
   0x1   :  { %15 = vsyncpa [#allocation6], 0 }
   0x2   :  { %16 = vsyncpa [#allocation4], 0  ;;  %s701_s30 = smov [#allocation2]   ;;  %s629_s13 = scalar_lea.hbm %s854_s7, 2048 }
   0x3   :  { %s36_s10 = sshll.u32 %s701_s30, 4  ;;  %p630_p0 = scmp.ne.s32.totalorder %s854_s7, %s629_s13  ;;  %s37_s10 = int_to_ptr.vmem [resolvable:$true] %s36_s10 }
   0x4   :  { %p633_p1 = scmp.lt.u32.totalorder %s629_s13, %s854_s7 }
   0x6   :  { %p635_p2 = pnand %p633_p1, %p630_p0 }
   0x8   :  { %638 = shalt.err (!%p635_p2)
}
   0x9   :  { %s639_s18 = scalar_lea.vmem %s37_s10, 2048  ;;  %p644_p4 = scmp.lt.s32.totalorder %s37_s10, %s37_s10 }
   0xa   :  { %p640_p3 = scmp.ne.s32.totalorder %s37_s10, %s639_s18  ;;  %p645_p5 = scmp.lt.s32.totalorder %s639_s18, %s639_s18 }
   0xc   :  { %p646_p6 = por %p645_p5, %p644_p4 }
   0xe   :  { %p647_p7 = pnand %p646_p6, %p640_p3 }
  0x10   :  { %650 = shalt.err (!%p647_p7)
}
  0x11   :  { %s702_s19 = smov 128   ;;  %s703_s20 = smov 8  }
  0x12   :  { %42 = dma.hbm_to_vmem [thread:$0]  %s854_s7, 2048, %s37_s10, [#allocation3], %s702_s19, %s702_s19, %s703_s20  }
  0x13   :  { %s704_s23 = smov [#allocation5]   ;;  %s651_s27 = scalar_lea.hbm %s855_s8, 2048 }
  0x14   :  { %s48_s24 = sshll.u32 %s704_s23, 4  ;;  %p652_p8 = scmp.ne.s32.totalorder %s855_s8, %s651_s27  ;;  %s49_s24 = int_to_ptr.vmem [resolvable:$true] %s48_s24 }
  0x15   :  { %p655_p9 = scmp.lt.u32.totalorder %s651_s27, %s855_s8 }
  0x17   :  { %p657_p10 = pnand %p655_p9, %p652_p8 }
  0x19   :  { %660 = shalt.err (!%p657_p10)
}
  0x1a   :  { %s661_s12 = scalar_lea.vmem %s49_s24, 2048  ;;  %p666_p12 = scmp.lt.s32.totalorder %s49_s24, %s49_s24 }
  0x1b   :  { %p662_p11 = scmp.ne.s32.totalorder %s49_s24, %s661_s12  ;;  %p667_p13 = scmp.lt.s32.totalorder %s661_s12, %s661_s12 }
  0x1d   :  { %p668_p0 = por %p667_p13, %p666_p12 }
  0x1f   :  { %p669_p1 = pnand %p668_p0, %p662_p11 }
  0x21   :  { %672 = shalt.err (!%p669_p1)
}
  0x22   :  { %54 = dma.hbm_to_vmem [thread:$0]  %s855_s8, 2048, %s49_s24, [#allocation6], %s702_s19, %s702_s19, %s703_s20  }
  0x23   :  { %695 = dma.done.wait [#allocation3], 2048  }
  0x24   :  { %696 = vsyncadd [#allocation3], 4294965248 }
  0x25   :  { %697 = dma.done.wait [#allocation6], 2048  }
  0x26   :  { %698 = vsyncadd [#allocation6], 4294965248  ;;  %v705_v0 = vmov 0   ;;  %v706_v1 = vmov 0.0|0.0   ;;  %v63_v2 = vld [vmem:[%s847_s0] sm:$0xff]  ;;  %v93_v3 = vld [vmem:[#allocation2] sm:$0xff]  ;;  %v79_v34 = vlaneseq }
  0x27   :  { %619 = vset.pattern.permute.xlu0 %v705_v0  ;;  %538 = vmatprep.subr.bf16.mxu0 %v706_v1  ;;  %v94_v4 = vld [vmem:[#allocation2 + $0x8] sm:$0xff]  ;;  %v95_v5 = vld [vmem:[#allocation2 + $0x10] sm:$0xff]  ;;  %v96_v6 = vld [vmem:[#allocation2 + $0x18] sm:$0xff]  ;;  %vm707_vm0 = vmmov 0   ;;  %v708_v18 = vmov 0.0   ;;  %s709_s20 = smov [#allocation7]  }
  0x28   :  { %562 = vmatprep.subr.bf16.mxu1 %v706_v1  ;;  %620 = vset.pattern.permute.xlu1 %v705_v0  ;;  %v70_v7 = vld [vmem:[%s849_s2] sm:$0xff]  ;;  %v539_v8 = vpack.c.bf16 %v94_v4, %v93_v3  ;;  %v542_v9 = vpack.c.bf16 %v96_v6, %v95_v5  ;;  %v97_v10 = vld [vmem:[#allocation2 + $0x20] sm:$0xff]  ;;  %v98_v11 = vld [vmem:[#allocation2 + $0x28] sm:$0xff]  ;;  %v80_v39 = vshrl.u32 %v79_v34, 7  ;;  %s371_s21 = sshll.u32 %s709_s20, 4  ;;  %s372_s21 = int_to_ptr.vmem [resolvable:$true] %s371_s21 }
  0x29   :  { %66 = vperm.xlu0 %619, %v63_v2   ;;  %v545_v12 = vpack.c.bf16 %v98_v11, %v97_v10  ;;  %v99_v13 = vld [vmem:[#allocation2 + $0x30] sm:$0xff]  ;;  %v100_v14 = vld [vmem:[#allocation2 + $0x38] sm:$0xff]  ;;  %v101_v16 = vld [vmem:[#allocation2 + $0x40] sm:$0xff]  ;;  %465 = vmatprep.mubr.msk.f32.mxu0 %vm707_vm0, %v708_v18  ;;  %s673_s22 = scalar_lea.vmem %s372_s21, 128  ;;  %p678_p3 = scmp.lt.s32.totalorder %s372_s21, %s372_s21 }
  0x2a   :  { %540 = vmatpush3.bf16.msra.mxu0 %v539_v8  ;;  %564 = vmatpush3.bf16.msra.mxu1 %v539_v8  ;;  %v548_v15 = vpack.c.bf16 %v100_v14, %v99_v13  ;;  %v102_v17 = vld [vmem:[#allocation2 + $0x48] sm:$0xff]  ;;  %v103_v20 = vld [vmem:[#allocation2 + $0x50] sm:$0xff]  ;;  %v104_v21 = vld [vmem:[#allocation2 + $0x58] sm:$0xff]  ;;  %v81_v42 = vsub.s32 0, %v80_v39  ;;  %v89_v45 = vsub.s32 1, %v80_v39  ;;  %p674_p2 = scmp.ne.s32.totalorder %s372_s21, %s673_s22  ;;  %p679_p4 = scmp.lt.s32.totalorder %s673_s22, %s673_s22 }
  0x2b   :  { %541 = vmatprep.subr.bf16.mxu0 %v706_v1  ;;  %565 = vmatprep.subr.bf16.mxu1 %v706_v1  ;;  %v551_v19 = vpack.c.bf16 %v102_v17, %v101_v16  ;;  %v554_v22 = vpack.c.bf16 %v104_v21, %v103_v20  ;;  %v105_v23 = vld [vmem:[#allocation2 + $0x60] sm:$0xff]  ;;  %v106_v24 = vld [vmem:[#allocation2 + $0x68] sm:$0xff]  ;;  %v249_v26 = vld [vmem:[%s848_s1] sm:$0xff] }
  0x2c   :  { %500 = vmatprep.mubr.msk.f32.mxu1 %vm707_vm0, %v708_v18  ;;  %v557_v25 = vpack.c.bf16 %v106_v24, %v105_v23  ;;  %v107_v27 = vld [vmem:[#allocation2 + $0x70] sm:$0xff]  ;;  %v108_v28 = vld [vmem:[#allocation2 + $0x78] sm:$0xff]  ;;  %255 = vperm.xlu1 %620, %v249_v26   ;;  %v270_v46 = vld [vmem:[#allocation5] sm:$0xff]  ;;  %p680_p5 = por %p679_p4, %p678_p3 }
  0x2d   :  { %73 = vperm.xlu0 %619, %v70_v7   ;;  %v259_v29 = vld [vmem:[%s850_s3] sm:$0xff]  ;;  %v560_v30 = vpack.c.bf16 %v108_v28, %v107_v27  ;;  %v271_v47 = vld [vmem:[#allocation5 + $0x8] sm:$0xff]  ;;  %v273_v53 = vld [vmem:[#allocation5 + $0x18] sm:$0xff] }
  0x2e   :  { %543 = vmatpush3.bf16.msra.mxu0 %v542_v9  ;;  %567 = vmatpush3.bf16.msra.mxu1 %v542_v9  ;;  %v61_v31 = vld [vmem:[%s851_s4] sm:$0xff]  ;;  %v587_v49 = vpack.c.bf16 %v271_v47, %v270_v46  ;;  %v274_v57 = vld [vmem:[#allocation5 + $0x20] sm:$0xff]  ;;  %v275_v58 = vld [vmem:[#allocation5 + $0x28] sm:$0xff]  ;;  %p681_p6 = pnand %p680_p5, %p674_p2 }
  0x2f   :  { %544 = vmatprep.subr.bf16.mxu0 %v706_v1  ;;  %568 = vmatprep.subr.bf16.mxu1 %v706_v1  ;;  %v62_v43 = vld [vmem:[%s852_s5] sm:$0x3]  ;;  %v593_v59 = vpack.c.bf16 %v275_v58, %v274_v57  ;;  %v277_v61 = vld [vmem:[#allocation5 + $0x38] sm:$0xff]  ;;  %v278_v63 = vld [vmem:[#allocation5 + $0x40] sm:$0xff] }
  0x30   :  { %265 = vperm.xlu1 %620, %v259_v29   ;;  %v82_v44 = vrot.slane %v62_v43, %v81_v42  ;;  %v90_v51 = vrot.slane %v62_v43, %v89_v45  ;;  %v272_v52 = vld [vmem:[#allocation5 + $0x10] sm:$0xff]  ;;  %v279_v0 = vld [vmem:[#allocation5 + $0x48] sm:$0xff]  ;;  %v281_v4 = vld [vmem:[#allocation5 + $0x58] sm:$0xff] }
  0x31   :  { %v590_v55 = vpack.c.bf16 %v273_v53, %v272_v52  ;;  %v276_v60 = vld [vmem:[#allocation5 + $0x30] sm:$0xff]  ;;  %v599_v2 = vpack.c.bf16 %v279_v0, %v278_v63  ;;  %v282_v6 = vld [vmem:[#allocation5 + $0x60] sm:$0xff]  ;;  %v283_v7 = vld [vmem:[#allocation5 + $0x68] sm:$0xff] }
  0x32   :  { %546 = vmatpush3.bf16.msra.mxu0 %v545_v12  ;;  %570 = vmatpush3.bf16.msra.mxu1 %v545_v12  ;;  %v596_v62 = vpack.c.bf16 %v277_v61, %v276_v60  ;;  %v280_v3 = vld [vmem:[#allocation5 + $0x50] sm:$0xff]  ;;  %v605_v8 = vpack.c.bf16 %v283_v7, %v282_v6  ;;  %v285_v10 = vld [vmem:[#allocation5 + $0x78] sm:$0xff] }
  0x33   :  { %547 = vmatprep.subr.bf16.mxu0 %v706_v1  ;;  %571 = vmatprep.subr.bf16.mxu1 %v706_v1  ;;  %v602_v5 = vpack.c.bf16 %v281_v4, %v280_v3  ;;  %v284_v9 = vld [vmem:[#allocation5 + $0x70] sm:$0xff] }
  0x34   :  { %v608_v11 = vpack.c.bf16 %v285_v10, %v284_v9  ;;  %v381_v26 = vld [vmem:[%s853_s6] ss:$0 sm:$0xff] }
  0x36   :  { %549 = vmatpush3.bf16.msra.mxu0 %v548_v15  ;;  %573 = vmatpush3.bf16.msra.mxu1 %v548_v15 }
  0x37   :  { %550 = vmatprep.subr.bf16.mxu0 %v706_v1  ;;  %574 = vmatprep.subr.bf16.mxu1 %v706_v1 }
  0x3a   :  { %552 = vmatpush3.bf16.msra.mxu0 %v551_v19  ;;  %576 = vmatpush3.bf16.msra.mxu1 %v551_v19 }
  0x3b   :  { %553 = vmatprep.subr.bf16.mxu0 %v706_v1  ;;  %577 = vmatprep.subr.bf16.mxu1 %v706_v1 }
  0x3e   :  { %555 = vmatpush3.bf16.msra.mxu0 %v554_v22  ;;  %579 = vmatpush3.bf16.msra.mxu1 %v554_v22 }
  0x3f   :  { %556 = vmatprep.subr.bf16.mxu0 %v706_v1  ;;  %580 = vmatprep.subr.bf16.mxu1 %v706_v1 }
  0x42   :  { %558 = vmatpush3.bf16.msra.mxu0 %v557_v25  ;;  %582 = vmatpush3.bf16.msra.mxu1 %v557_v25 }
  0x43   :  { %559 = vmatprep.subr.bf16.mxu0 %v706_v1  ;;  %583 = vmatprep.subr.bf16.mxu1 %v706_v1 }
  0x46   :  { %561 = vmatpush3.bf16.msra.mxu0 %v560_v30  ;;  %585 = vmatpush3.bf16.msra.mxu1 %v560_v30 }
  0x47   :  { %586 = vmatprep.subr.bf16.mxu0 %v706_v1 }
  0xa8   :  { %v67_v32 = vpop.permute.xlu0 %66 }
  0xa9   :  { %v69_v33 = vsub.f32 %v67_v32, %v61_v31 }
  0xab   :  { %v77_v35 = vmul.f32 %v69_v33, %v69_v33  ;;  %v256_v20 = vpop.permute.xlu1 %255 }
  0xac   :  { %v74_v36 = vpop.permute.xlu0 %73 }
  0xad   :  { %v78_v37 = vmax.f32 %v77_v35, 1e-20  ;;  %v76_v38 = vsub.f32 %v74_v36, %v61_v31 }
  0xaf   :  { %621 = vrcp.f32 %v78_v37  ;;  %v85_v40 = vmul.f32 %v76_v38, %v76_v38  ;;  %v266_v23 = vpop.permute.xlu1 %265 }
  0xb1   :  { %v86_v41 = vmax.f32 %v85_v40, 1e-20 }
  0xb3   :  { %623 = vrcp.f32 %v86_v41 }
  0xb9   :  { %v622_v48 = vpop.eup %621 }
  0xba   :  { %v84_v50 = vmul.f32 %v622_v48, %v82_v44 }
  0xbc   :  { %466 = vmatmul.mubr.f32.vlgmr.msra.gmra.mrb[0].mxu0 %v84_v50 }
  0xbd   :  { %v624_v54 = vpop.eup %623  ;;  %588 = vmatpush3.bf16.msra.mxu0 %v587_v49  ;;  %535 = vmatprep.mubr.msk.f32.mxu0 %vm707_vm0, %v708_v18 }
  0xbe   :  { %v92_v56 = vmul.f32 %v624_v54, %v90_v51  ;;  %589 = vmatprep.subr.bf16.mxu0 %v706_v1 }
  0xc0   :  { %501 = vmatmul.mubr.f32.vlgmr.msra.gmra.mrb[0].mxu1 %v92_v56 }
  0xc1   :  { %591 = vmatpush3.bf16.msra.mxu0 %v590_v55 }
  0xc2   :  { %592 = vmatprep.subr.bf16.mxu0 %v706_v1 }
  0xc5   :  { %594 = vmatpush3.bf16.msra.mxu0 %v593_v59 }
  0xc6   :  { %595 = vmatprep.subr.bf16.mxu0 %v706_v1 }
  0xc9   :  { %597 = vmatpush3.bf16.msra.mxu0 %v596_v62 }
  0xca   :  { %598 = vmatprep.subr.bf16.mxu0 %v706_v1 }
  0xcd   :  { %600 = vmatpush3.bf16.msra.mxu0 %v599_v2 }
  0xce   :  { %601 = vmatprep.subr.bf16.mxu0 %v706_v1 }
  0xd1   :  { %603 = vmatpush3.bf16.msra.mxu0 %v602_v5 }
  0xd2   :  { %604 = vmatprep.subr.bf16.mxu0 %v706_v1 }
  0xd5   :  { %606 = vmatpush3.bf16.msra.mxu0 %v605_v8 }
  0xd6   :  { %607 = vmatprep.subr.bf16.mxu0 %v706_v1 }
  0xd9   :  { %609 = vmatpush3.bf16.msra.mxu0 %v608_v11 }
 0x18f   :  { %v175_v12 = vpop.f32.mrb[0].mxu0 }
 0x190   :  { %v250_v13 = vsub.f32 0.0, %v175_v12  ;;  %v467_v14 = vpop.f32.mrb[1].mxu0 }
 0x192   :  { %v251_v15 = vmul.f32 1.442695, %v250_v13 }
 0x193   :  { %v245_v16 = vpop.f32.mrb[0].mxu1 }
 0x194   :  { %v260_v17 = vsub.f32 0.0, %v245_v16  ;;  %v502_v18 = vpop.f32.mrb[1].mxu1  ;;  %625 = vpow2.f32 %v251_v15 }
 0x196   :  { %v261_v19 = vmul.f32 1.442695, %v260_v17 }
 0x198   :  { %627 = vpow2.f32 %v261_v19 }
 0x19e   :  { %v626_v21 = vpop.eup %625 }
 0x19f   :  { %v258_v24 = vmul.f32 %v626_v21, %v256_v20 }
 0x1a2   :  { %v628_v22 = vpop.eup %627 }
 0x1a3   :  { %v268_v1 = vmul.f32 %v628_v22, %v266_v23 }
 0x1a5   :  { %v269_v25 = vadd.f32 %v268_v1, %v258_v24 }
 0x1a7   :  { %536 = vmatmul.mubr.f32.vlgmr.msra.gmra.mrb[2].mxu0 %v269_v25 }
 0x27a   :  { %v352_v27 = vpop.f32.mrb[2].mxu0 }
 0x27b   :  { %v363_v28 = vsub.f32 %v352_v27, %v381_v26  ;;  %v537_v29 = vpop.f32.mrb[3].mxu0 }
 0x27d   :  { %364 = vst [vmem:[#allocation7] sm:$0xff] %v363_v28 }
 0x27e   :  { %684 = shalt.err (!%p681_p6)
}
 0x27f   :  { %s685_s25 = scalar_lea.hbm %s856_s9, 128 }
 0x280   :  { %p686_p7 = scmp.ne.s32.totalorder %s856_s9, %s685_s25  ;;  %p689_p8 = scmp.lt.u32.totalorder %s685_s25, %s856_s9 }
 0x282   :  { %p691_p9 = pnand %p689_p8, %p686_p7 }
 0x284   :  { %694 = shalt.err (!%p691_p9)
}
 0x285   :  { %374 = dma.vmem_to_hbm [thread:$0]  %s372_s21, 128, %s856_s9, [#allocation4]  }
 0x286   :  { %699 = dma.done.wait [#allocation4], 128  }
 0x287   :  { %700 = vsyncadd [#allocation4], 4294967168 }
 0x288   :  { %378 = vsyncpa [#allocation3], 1 }
 0x289   :  { %379 = vsyncpa [#allocation6], 1 }
 0x28a   :  { %380 = vsyncpa [#allocation4], 1 }

</bundles_post_ra>
